<compile_context>
chip_gen: v6e
topology: v6e:2x2x1
jax: 0.10.0
libtpu: 0.0.40
codegen_flags: <defaults>
</compile_context>

<pallas_src>
import functools

import jax
import jax.numpy as jnp
from jax.experimental import pallas as pl
from jax.experimental.pallas import tpu as pltpu


def _lista_kernel(stage, m2, n2,
                  th_ref,      # SMEM (stage,)              per-layer thresholds (f32)
                  wb_ref,      # VMEM (stage, 2N, Kpad)     fused, padded [B_blk | W_blk]
                  c_ref,       # VMEM (2P, 2N)              fused C block
                  y_ref,       # VMEM (2M, BSBLK)           fused [y_r; y_i] batch block
                  out_ref,     # VMEM (2P, BSBLK)           fused [Cx_r; Cx_i]
                  s_ref):      # VMEM scratch (Kpad, BSBLK): rows [0:2M]=y, [2M:2M+2N]=x, rest=0
    f32 = jnp.float32

    # Reset x rows + contraction-padding rows (scratch persists across grid steps),
    # then write the measurement rows once.
    pad_rows = s_ref.shape[0] - m2
    s_ref[m2:, :] = jnp.zeros((pad_rows, s_ref.shape[1]), dtype=s_ref.dtype)
    s_ref[0:m2, :] = y_ref[...].astype(s_ref.dtype)

    # All layers are uniform: one fused matmul [B_blk | W_blk | 0] @ [y; x; 0].
    # `stage` is static -> Python loop unrolls with per-layer parameters.
    for layer in range(stage):
        th = th_ref[layer]                                   # scalar from SMEM, read once
        z = jnp.dot(wb_ref[layer], s_ref[...], preferred_element_type=f32)
        # Exact PyTorch soft_comp semantics (valid even for negative thresholds).
        x = jnp.where(z > th, z - th, 0.0) + jnp.where(z < -th, z + th, 0.0)
        s_ref[m2:m2 + n2, :] = x.astype(s_ref.dtype)

    # Output: single fused C_blk matmul on the final sparse-code block.
    out_ref[...] = jnp.dot(c_ref[...], s_ref[m2:m2 + n2, :],
                           preferred_element_type=f32).astype(out_ref.dtype)


def prepare_lista_params(thresholds, w_real, w_imag, b_real, b_imag,
                         c_real, c_imag, *, compute_dtype=jnp.float32):
    """Build the fused/padded real block matrices once (weights are static)."""
    f32 = jnp.float32
    stage, n, _ = w_real.shape
    m = b_real.shape[2]
    n2, m2 = 2 * n, 2 * m

    w_real, w_imag, b_real, b_imag, c_real, c_imag = [
        a.astype(f32) for a in (w_real, w_imag, b_real, b_imag, c_real, c_imag)]

    w_blk = jnp.concatenate(
        [jnp.concatenate([w_real, -w_imag], axis=2),
         jnp.concatenate([w_imag,  w_real], axis=2)], axis=1)        # (stage,2N,2N)
    b_blk = jnp.concatenate(
        [jnp.concatenate([b_real, -b_imag], axis=2),
         jnp.concatenate([b_imag,  b_real], axis=2)], axis=1)        # (stage,2N,2M)
    wb = jnp.concatenate([b_blk, w_blk], axis=2)                     # (stage,2N,2M+2N)

    # Pad the fused contraction dim up to a multiple of 128 so wb loads are
    # unmasked/lane-dense; the zero columns meet zero scratch rows -> no effect.
    k = m2 + n2
    k_pad = pl.cdiv(k, 128) * 128
    if k_pad != k:
        wb = jnp.pad(wb, ((0, 0), (0, 0), (0, k_pad - k)))

    c_blk = jnp.concatenate(
        [jnp.concatenate([c_real, -c_imag], axis=1),
         jnp.concatenate([c_imag,  c_real], axis=1)], axis=0)        # (2P,2N)

    return (thresholds.astype(f32),
            wb.astype(compute_dtype),
            c_blk.astype(compute_dtype))


def lista_forward_prepared(thresholds, wb, c_blk, y_real, y_imag, *, bs_block=512):
    """LISTA forward from pre-built fused params; grid over lane-dense batch blocks."""
    f32 = jnp.float32
    compute_dtype = wb.dtype
    stage, n2, k_pad = wb.shape
    p2 = c_blk.shape[0]
    m = y_real.shape[0]
    m2 = 2 * m
    bs = y_real.shape[1]

    y_blk = jnp.concatenate([y_real.astype(compute_dtype),
                             y_imag.astype(compute_dtype)], axis=0)  # (2M,BS)

    # Lane-dense batch block: multiple of 128, capped at the padded batch, and
    # split into >=2 blocks when the batch allows it so v7x can use both TCs.
    pbs128 = pl.cdiv(bs, 128) * 128
    blk = max(128, (min(bs_block, pbs128) // 128) * 128)
    if pbs128 >= 256 and pbs128 // blk < 2:
        blk = max(128, ((pbs128 // 2) // 128) * 128)
    padded_bs = pl.cdiv(bs, blk) * blk
    if padded_bs != bs:
        y_blk = jnp.pad(y_blk, ((0, 0), (0, padded_bs - bs)))
    grid = (padded_bs // blk,)

    kernel = functools.partial(_lista_kernel, stage, m2, n2)
    out = pl.pallas_call(
        kernel,
        out_shape=jax.ShapeDtypeStruct((p2, padded_bs), f32),
        grid=grid,
        in_specs=[
            pl.BlockSpec(memory_space=pltpu.MemorySpace.SMEM),       # thresholds
            pl.BlockSpec((stage, n2, k_pad), lambda b: (0, 0, 0)),   # fused padded [B|W]
            pl.BlockSpec((p2, n2), lambda b: (0, 0)),                # fused C
            pl.BlockSpec((m2, blk), lambda b: (0, b)),               # y batch block
        ],
        out_specs=pl.BlockSpec((p2, blk), lambda b: (0, b)),
        scratch_shapes=[pltpu.VMEM((k_pad, blk), compute_dtype)],
        compiler_params=pltpu.CompilerParams(
            dimension_semantics=("parallel",)),
    )(thresholds, wb, c_blk, y_blk)

    p = p2 // 2
    return out[:p, :bs], out[p:p2, :bs]


def lista_forward(thresholds, w_real, w_imag, b_real, b_imag,
                  c_real, c_imag, y_real, y_imag, *,
                  bs_block=512, compute_dtype=jnp.float32):
    """Convenience wrapper: prepare params + run the fused kernel."""
    params = prepare_lista_params(thresholds, w_real, w_imag, b_real, b_imag,
                                  c_real, c_imag, compute_dtype=compute_dtype)
    return lista_forward_prepared(*params, y_real, y_imag, bs_block=bs_block)


def _soft_comp_ref(x, threshold):
    mask1 = (x > threshold).astype(x.dtype)
    mask2 = (x < -threshold).astype(x.dtype)
    out = jnp.zeros_like(x)
    out = out + mask1 * (-threshold) + mask1 * x
    out = out + mask2 * threshold + mask2 * x
    return out


def lista_reference(thresholds, w_real, w_imag, b_real, b_imag,
                    c_real, c_imag, y_real, y_imag):
    """Pure-JAX reference mirroring the PyTorch forward."""
    stage, n, _ = w_real.shape
    bs = y_real.shape[1]
    x_r = jnp.zeros((n, bs), jnp.float32)
    x_i = jnp.zeros((n, bs), jnp.float32)
    for layer in range(stage):
        th = thresholds[layer]
        z_r = (w_real[layer] @ x_r - w_imag[layer] @ x_i
               + b_real[layer] @ y_real - b_imag[layer] @ y_imag)
        z_i = (w_real[layer] @ x_i + w_imag[layer] @ x_r
               + b_real[layer] @ y_imag + b_imag[layer] @ y_real)
        x_r = _soft_comp_ref(z_r, th)
        x_i = _soft_comp_ref(z_i, th)
    out_r = c_real @ x_r - c_imag @ x_i
    out_i = c_imag @ x_r + c_real @ x_i
    return out_r, out_i


if __name__ == "__main__":
    # Small, LISTA-consistent shapes:
    #   M = measurement dim, N = sparse-code dim, P = output dim, BS = batch.
    M, N, P, BS = 16, 32, 16, 8
    STAGE = 3
    THR = 0.1

    key = jax.random.PRNGKey(0)
    keys = jax.random.split(key, 10)

    # _w2_ -> W (N, N); replicated per layer at init (as nn.Parameter copies).
    w2_real = 0.1 * jax.random.normal(keys[0], (N, N), jnp.float32)
    w2_imag = 0.1 * jax.random.normal(keys[1], (N, N), jnp.float32)
    # _w1_ -> B (N, M)
    w1_real = 0.1 * jax.random.normal(keys[2], (N, M), jnp.float32)
    w1_imag = 0.1 * jax.random.normal(keys[3], (N, M), jnp.float32)
    # C (P, N)
    c_real = 0.1 * jax.random.normal(keys[4], (P, N), jnp.float32)
    c_imag = 0.1 * jax.random.normal(keys[5], (P, N), jnp.float32)

    # Stack per-layer params (each layer initialized identically, as in __init__).
    w_real = jnp.broadcast_to(w2_real, (STAGE, N, N))
    w_imag = jnp.broadcast_to(w2_imag, (STAGE, N, N))
    b_real = jnp.broadcast_to(w1_real, (STAGE, N, M))
    b_imag = jnp.broadcast_to(w1_imag, (STAGE, N, M))
    thresholds = jnp.full((STAGE,), THR, jnp.float32)

    # Inputs y_real, y_imag : (M, BS)
    y_real = jax.random.normal(keys[6], (M, BS), jnp.float32)
    y_imag = jax.random.normal(keys[7], (M, BS), jnp.float32)

    # Build fused params ONCE (weights static), then run the jitted forward.
    params = prepare_lista_params(thresholds, w_real, w_imag, b_real, b_imag,
                                  c_real, c_imag)
    params = jax.block_until_ready(params)
    fwd = jax.jit(functools.partial(lista_forward_prepared, bs_block=512))
    out_r, out_i = fwd(*params, y_real, y_imag)
    jax.block_until_ready((out_r, out_i))

    ref_r, ref_i = lista_reference(thresholds, w_real, w_imag, b_real, b_imag,
                                   c_real, c_imag, y_real, y_imag)
    assert out_r.shape == (P, BS) and out_i.shape == (P, BS)
    assert jnp.allclose(out_r, ref_r, atol=1e-4, rtol=1e-4)
    assert jnp.allclose(out_i, ref_i, atol=1e-4, rtol=1e-4)

    print("KERNEL_OK")
</pallas_src>

<mosaic_0001>
module attributes {stable_mosaic.version = 11 : i64} {
  func.func @_lista_kernel(%arg0: i32, %arg1: memref<3xf32, #tpu.memory_space<smem>>, %arg2: memref<3x64x128xf32, #tpu.memory_space<vmem>>, %arg3: memref<32x64xf32, #tpu.memory_space<vmem>>, %arg4: memref<32x128xf32, #tpu.memory_space<vmem>>, %arg5: memref<32x128xf32, #tpu.memory_space<vmem>>, %arg6: memref<128x128xf32, #tpu.memory_space<vmem>>) attributes {dimension_semantics = [#tpu.dimension_semantics<parallel>], iteration_bounds = array<i64: 1>, scalar_prefetch = 0 : i64, scratch_operands = 1 : i64, tpu.core_type = #tpu.core_type<tc>, window_params = [{transform_indices = @transform_0, window_bounds = array<i64: 3>}, {pipeline_mode = #tpu.pipeline_mode<synchronous>, transform_indices = @transform_1, window_bounds = array<i64: 3, 64, 128>}, {pipeline_mode = #tpu.pipeline_mode<synchronous>, transform_indices = @transform_2, window_bounds = array<i64: 32, 64>}, {transform_indices = @transform_3, window_bounds = array<i64: 32, 128>}, {transform_indices = @transform_4, window_bounds = array<i64: 32, 128>}]} {
    %cst = arith.constant 0.000000e+00 : f32
    %0 = vector.broadcast %cst : f32 to vector<96x128xf32>
    %c32 = arith.constant 32 : index
    %c0 = arith.constant 0 : index
    %1 = vector.load %arg6[%c32, %c0] : memref<128x128xf32, #tpu.memory_space<vmem>>, vector<96x128xf32>
    tpu.vector_store %arg6[%c32, %c0], %0 {strides = array<i32>} : memref<128x128xf32, #tpu.memory_space<vmem>>, vector<96x128xf32>,
    %c0_0 = arith.constant 0 : index
    %c0_1 = arith.constant 0 : index
    %2 = vector.load %arg4[%c0_0, %c0_1] : memref<32x128xf32, #tpu.memory_space<vmem>>, vector<32x128xf32>
    %c0_2 = arith.constant 0 : index
    %c0_3 = arith.constant 0 : index
    %3 = vector.load %arg6[%c0_2, %c0_3] : memref<128x128xf32, #tpu.memory_space<vmem>>, vector<32x128xf32>
    tpu.vector_store %arg6[%c0_2, %c0_3], %2 {strides = array<i32>} : memref<128x128xf32, #tpu.memory_space<vmem>>, vector<32x128xf32>,
    %c0_4 = arith.constant 0 : index
    %4 = memref.load %arg1[%c0_4] : memref<3xf32, #tpu.memory_space<smem>>
    %c0_5 = arith.constant 0 : index
    %c0_6 = arith.constant 0 : index
    %c0_7 = arith.constant 0 : index
    %5 = vector.load %arg2[%c0_5, %c0_6, %c0_7] : memref<3x64x128xf32, #tpu.memory_space<vmem>>, vector<1x64x128xf32>
    %6 = vector.shape_cast %5 : vector<1x64x128xf32> to vector<64x128xf32>
    %c0_8 = arith.constant 0 : index
    %c0_9 = arith.constant 0 : index
    %7 = vector.load %arg6[%c0_8, %c0_9] : memref<128x128xf32, #tpu.memory_space<vmem>>, vector<128x128xf32>
    %cst_10 = arith.constant dense<0.000000e+00> : vector<64x128xf32>
    %8 = tpu.matmul %6, %7, %cst_10 {dimension_numbers = #tpu.dot_dimension_numbers<[1], [0], [0], [1], [0, 0, 1, 1], [], []>} : vector<64x128xf32>, vector<128x128xf32>, vector<64x128xf32> -> vector<64x128xf32>
    %9 = vector.broadcast %4 : f32 to vector<64x128xf32>
    %10 = arith.cmpf ogt, %8, %9 : vector<64x128xf32>
    %11 = vector.broadcast %4 : f32 to vector<64x128xf32>
    %12 = arith.subf %8, %11 : vector<64x128xf32>
    %cst_11 = arith.constant 0.000000e+00 : f32
    %13 = vector.broadcast %cst_11 : f32 to vector<64x128xf32>
    %14 = arith.select %10, %12, %13 : vector<64x128xi1>, vector<64x128xf32>
    %cst_12 = arith.constant 0.000000e+00 : f32
    %15 = arith.subf %cst_12, %4 : f32
    %16 = vector.broadcast %15 : f32 to vector<64x128xf32>
    %17 = arith.cmpf olt, %8, %16 : vector<64x128xf32>
    %18 = vector.broadcast %4 : f32 to vector<64x128xf32>
    %19 = arith.addf %8, %18 : vector<64x128xf32>
    %cst_13 = arith.constant 0.000000e+00 : f32
    %20 = vector.broadcast %cst_13 : f32 to vector<64x128xf32>
    %21 = arith.select %17, %19, %20 : vector<64x128xi1>, vector<64x128xf32>
    %22 = arith.addf %14, %21 : vector<64x128xf32>
    %c32_14 = arith.constant 32 : index
    %c0_15 = arith.constant 0 : index
    %23 = vector.load %arg6[%c32_14, %c0_15] : memref<128x128xf32, #tpu.memory_space<vmem>>, vector<64x128xf32>
    tpu.vector_store %arg6[%c32_14, %c0_15], %22 {strides = array<i32>} : memref<128x128xf32, #tpu.memory_space<vmem>>, vector<64x128xf32>,
    %c1 = arith.constant 1 : index
    %24 = memref.load %arg1[%c1] : memref<3xf32, #tpu.memory_space<smem>>
    %c1_16 = arith.constant 1 : index
    %c0_17 = arith.constant 0 : index
    %c0_18 = arith.constant 0 : index
    %25 = vector.load %arg2[%c1_16, %c0_17, %c0_18] : memref<3x64x128xf32, #tpu.memory_space<vmem>>, vector<1x64x128xf32>
    %26 = vector.shape_cast %25 : vector<1x64x128xf32> to vector<64x128xf32>
    %c0_19 = arith.constant 0 : index
    %c0_20 = arith.constant 0 : index
    %27 = vector.load %arg6[%c0_19, %c0_20] : memref<128x128xf32, #tpu.memory_space<vmem>>, vector<128x128xf32>
    %cst_21 = arith.constant dense<0.000000e+00> : vector<64x128xf32>
    %28 = tpu.matmul %26, %27, %cst_21 {dimension_numbers = #tpu.dot_dimension_numbers<[1], [0], [0], [1], [0, 0, 1, 1], [], []>} : vector<64x128xf32>, vector<128x128xf32>, vector<64x128xf32> -> vector<64x128xf32>
    %29 = vector.broadcast %24 : f32 to vector<64x128xf32>
    %30 = arith.cmpf ogt, %28, %29 : vector<64x128xf32>
    %31 = vector.broadcast %24 : f32 to vector<64x128xf32>
    %32 = arith.subf %28, %31 : vector<64x128xf32>
    %cst_22 = arith.constant 0.000000e+00 : f32
    %33 = vector.broadcast %cst_22 : f32 to vector<64x128xf32>
    %34 = arith.select %30, %32, %33 : vector<64x128xi1>, vector<64x128xf32>
    %cst_23 = arith.constant 0.000000e+00 : f32
    %35 = arith.subf %cst_23, %24 : f32
    %36 = vector.broadcast %35 : f32 to vector<64x128xf32>
    %37 = arith.cmpf olt, %28, %36 : vector<64x128xf32>
    %38 = vector.broadcast %24 : f32 to vector<64x128xf32>
    %39 = arith.addf %28, %38 : vector<64x128xf32>
    %cst_24 = arith.constant 0.000000e+00 : f32
    %40 = vector.broadcast %cst_24 : f32 to vector<64x128xf32>
    %41 = arith.select %37, %39, %40 : vector<64x128xi1>, vector<64x128xf32>
    %42 = arith.addf %34, %41 : vector<64x128xf32>
    %c32_25 = arith.constant 32 : index
    %c0_26 = arith.constant 0 : index
    %43 = vector.load %arg6[%c32_25, %c0_26] : memref<128x128xf32, #tpu.memory_space<vmem>>, vector<64x128xf32>
    tpu.vector_store %arg6[%c32_25, %c0_26], %42 {strides = array<i32>} : memref<128x128xf32, #tpu.memory_space<vmem>>, vector<64x128xf32>,
    %c2 = arith.constant 2 : index
    %44 = memref.load %arg1[%c2] : memref<3xf32, #tpu.memory_space<smem>>
    %c2_27 = arith.constant 2 : index
    %c0_28 = arith.constant 0 : index
    %c0_29 = arith.constant 0 : index
    %45 = vector.load %arg2[%c2_27, %c0_28, %c0_29] : memref<3x64x128xf32, #tpu.memory_space<vmem>>, vector<1x64x128xf32>
    %46 = vector.shape_cast %45 : vector<1x64x128xf32> to vector<64x128xf32>
    %c0_30 = arith.constant 0 : index
    %c0_31 = arith.constant 0 : index
    %47 = vector.load %arg6[%c0_30, %c0_31] : memref<128x128xf32, #tpu.memory_space<vmem>>, vector<128x128xf32>
    %cst_32 = arith.constant dense<0.000000e+00> : vector<64x128xf32>
    %48 = tpu.matmul %46, %47, %cst_32 {dimension_numbers = #tpu.dot_dimension_numbers<[1], [0], [0], [1], [0, 0, 1, 1], [], []>} : vector<64x128xf32>, vector<128x128xf32>, vector<64x128xf32> -> vector<64x128xf32>
    %49 = vector.broadcast %44 : f32 to vector<64x128xf32>
    %50 = arith.cmpf ogt, %48, %49 : vector<64x128xf32>
    %51 = vector.broadcast %44 : f32 to vector<64x128xf32>
    %52 = arith.subf %48, %51 : vector<64x128xf32>
    %cst_33 = arith.constant 0.000000e+00 : f32
    %53 = vector.broadcast %cst_33 : f32 to vector<64x128xf32>
    %54 = arith.select %50, %52, %53 : vector<64x128xi1>, vector<64x128xf32>
    %cst_34 = arith.constant 0.000000e+00 : f32
    %55 = arith.subf %cst_34, %44 : f32
    %56 = vector.broadcast %55 : f32 to vector<64x128xf32>
    %57 = arith.cmpf olt, %48, %56 : vector<64x128xf32>
    %58 = vector.broadcast %44 : f32 to vector<64x128xf32>
    %59 = arith.addf %48, %58 : vector<64x128xf32>
    %cst_35 = arith.constant 0.000000e+00 : f32
    %60 = vector.broadcast %cst_35 : f32 to vector<64x128xf32>
    %61 = arith.select %57, %59, %60 : vector<64x128xi1>, vector<64x128xf32>
    %62 = arith.addf %54, %61 : vector<64x128xf32>
    %c32_36 = arith.constant 32 : index
    %c0_37 = arith.constant 0 : index
    %63 = vector.load %arg6[%c32_36, %c0_37] : memref<128x128xf32, #tpu.memory_space<vmem>>, vector<64x128xf32>
    tpu.vector_store %arg6[%c32_36, %c0_37], %62 {strides = array<i32>} : memref<128x128xf32, #tpu.memory_space<vmem>>, vector<64x128xf32>,
    %c0_38 = arith.constant 0 : index
    %c0_39 = arith.constant 0 : index
    %64 = vector.load %arg3[%c0_38, %c0_39] : memref<32x64xf32, #tpu.memory_space<vmem>>, vector<32x64xf32>
    %c32_40 = arith.constant 32 : index
    %c0_41 = arith.constant 0 : index
    %65 = vector.load %arg6[%c32_40, %c0_41] : memref<128x128xf32, #tpu.memory_space<vmem>>, vector<64x128xf32>
    %cst_42 = arith.constant dense<0.000000e+00> : vector<32x128xf32>
    %66 = tpu.matmul %64, %65, %cst_42 {dimension_numbers = #tpu.dot_dimension_numbers<[1], [0], [0], [1], [0, 0, 1, 1], [], []>} : vector<32x64xf32>, vector<64x128xf32>, vector<32x128xf32> -> vector<32x128xf32>
    %c0_43 = arith.constant 0 : index
    %c0_44 = arith.constant 0 : index
    %67 = vector.load %arg5[%c0_43, %c0_44] : memref<32x128xf32, #tpu.memory_space<vmem>>, vector<32x128xf32>
    tpu.vector_store %arg5[%c0_43, %c0_44], %66 {strides = array<i32>} : memref<32x128xf32, #tpu.memory_space<vmem>>, vector<32x128xf32>,
    return
  }
  func.func @transform_0(%arg0: i32) -> i32 {
    %c0_i32 = arith.constant 0 : i32
    %c0_i32_0 = arith.constant 0 : i32
    return %c0_i32 : i32
  }
  func.func @transform_1(%arg0: i32) -> (i32, i32, i32) {
    %c0_i32 = arith.constant 0 : i32
    %c0_i32_0 = arith.constant 0 : i32
    %c0_i32_1 = arith.constant 0 : i32
    %c0_i32_2 = arith.constant 0 : i32
    return %c0_i32, %c0_i32_0, %c0_i32_1 : i32, i32, i32
  }
  func.func @transform_2(%arg0: i32) -> (i32, i32) {
    %c0_i32 = arith.constant 0 : i32
    %c0_i32_0 = arith.constant 0 : i32
    %c0_i32_1 = arith.constant 0 : i32
    return %c0_i32, %c0_i32_0 : i32, i32
  }
  func.func @transform_3(%arg0: i32) -> (i32, i32) {
    %c0_i32 = arith.constant 0 : i32
    %c0_i32_0 = arith.constant 0 : i32
    return %c0_i32, %arg0 : i32, i32
  }
  func.func @transform_4(%arg0: i32) -> (i32, i32) {
    %c0_i32 = arith.constant 0 : i32
    %c0_i32_0 = arith.constant 0 : i32
    return %c0_i32, %arg0 : i32, i32
  }
}

</mosaic_0001>

<bundles_post_ra>
// kernel: lista_forward_prepared.1
= control target key start
LH: loop header
LB: loop body
LE: loop exit
PB: predicated region body
PF: predicated region fallthrough
CT: control target
= control target key end

     0   :  { %9 = vsyncpa [#allocation5], 0  ;;  %s1282_s0 = inlined_call_operand.vmem [shape: f32[3], index: 0, kind: input, shape index: {}]   ;;  %s1283_s1 = inlined_call_operand.hbm [shape: f32[3,64,128], index: 1, kind: input, shape index: {}]   ;;  %s1284_s2 = inlined_call_operand.vmem [shape: f32[32,64], index: 2, kind: input, shape index: {}]   ;;  %s1285_s3 = inlined_call_operand.vmem [shape: f32[32,128], index: 3, kind: input, shape index: {}]   ;;  %s1286_s4 = inlined_call_operand.vmem [shape: f32[32,128], index: 4, kind: output, shape index: {}]  }
   0x1   :  { %s17_s17 = sshll.u32 %s1282_s0, 4  ;;  %s18_s17 = int_to_ptr.vmem [resolvable:$true] %s17_s17 }
   0x2   :  { %10 = vsyncpa [#allocation4], 0  ;;  %s965_s18 = scalar_lea.vmem %s18_s17, 16  ;;  %p970_p1 = scmp.lt.s32.totalorder %s18_s17, %s18_s17 }
   0x3   :  { %p966_p0 = scmp.ne.s32.totalorder %s18_s17, %s965_s18  ;;  %p971_p2 = scmp.lt.s32.totalorder %s965_s18, %s965_s18 }
   0x5   :  { %p972_p3 = por %p971_p2, %p970_p1 }
   0x7   :  { %p973_p4 = pnand %p972_p3, %p966_p0 }
   0x9   :  { %976 = shalt.err (!%p973_p4)
}
   0xa   :  { %s1001_s19 = smov [#allocation3]   ;;  %s1002_s20 = smov [#allocation6]  }
   0xb   :  { %20 = dma.vmem_to_smem %s18_s17, 16, %s1001_s19, [#allocation5]  }
   0xc   :  { %s26_s21 = sshll.u32 %s1002_s20, 4  ;;  %s27_s21 = int_to_ptr.vmem [resolvable:$true] %s26_s21 }
   0xd   :  { %s985_s22 = scalar_lea.vmem %s27_s21, 3072  ;;  %p990_p6 = scmp.lt.s32.totalorder %s27_s21, %s27_s21 }
   0xe   :  { %p986_p5 = scmp.ne.s32.totalorder %s27_s21, %s985_s22  ;;  %p991_p7 = scmp.lt.s32.totalorder %s985_s22, %s985_s22 }
  0x10   :  { %p992_p8 = por %p991_p7, %p990_p6 }
  0x12   :  { %p993_p9 = pnand %p992_p8, %p986_p5 }
  0x14   :  { %996 = shalt.err (!%p993_p9)
}
  0x15   :  { %s1003_s0 = smov 128   ;;  %s1004_s23 = smov 8  }
  0x16   :  { %32 = dma.hbm_to_vmem [thread:$0]  %s1283_s1, 3072, %s27_s21, [#allocation4], %s1003_s0, %s1003_s0, %s1004_s23  }
  0x17   :  { %997 = dma.done.wait [#allocation5], 16  }
  0x18   :  { %998 = vsyncadd [#allocation5], 4294967280 }
  0x19   :  { %999 = dma.done.wait [#allocation4], 3072  }
  0x1a   :  { %1000 = vsyncadd [#allocation4], 4294964224 }
  0x1b   :  { %43 = sfence }
  0x1c   :  { %v1039_v0 = vld [vmem:[%s1285_s3 + $0x18] sm:$0xff]  ;;  %v1044_v1 = vld [vmem:[%s1285_s3 + $0x10] sm:$0xff]  ;;  %v65_v2 = vld [vmem:[#allocation6] sm:$0xff]  ;;  %s777_s8 = sld [smem:[#allocation3 + $0x1]] }
  0x1d   :  { %847 = vmatprep.subr.mxu0 %v1039_v0  ;;  %v1051_v3 = vld [vmem:[%s1285_s3 + $0x8] sm:$0xff]  ;;  %855 = vmatprep.mubr.f32.mxu0 %v65_v2  ;;  %v1058_v4 = vld [vmem:[%s1285_s3] sm:$0xff]  ;;  %v67_v6 = vld [vmem:[#allocation6 + $0x10] sm:$0xff]  ;;  %s64_s3 = sld [smem:[#allocation3]] }
  0x1e   :  { %848 = vmatpush3.msra.mxu0 %v1039_v0  ;;  %v66_v5 = vld [vmem:[#allocation6 + $0x8] sm:$0xff]  ;;  %v68_v7 = vld [vmem:[#allocation6 + $0x18] sm:$0xff]  ;;  %v69_v8 = vld [vmem:[#allocation6 + $0x20] sm:$0xff]  ;;  %s778_s12 = sld [smem:[#allocation3 + $0x2]] }
  0x1f   :  { %849 = vmatprep.subr.mxu0 %v1044_v1  ;;  %v70_v9 = vld [vmem:[#allocation6 + $0x28] sm:$0xff]  ;;  %v71_v10 = vld [vmem:[#allocation6 + $0x30] sm:$0xff]  ;;  %v72_v11 = vld [vmem:[#allocation6 + $0x38] sm:$0xff] }
  0x20   :  { %850 = vmatpush3.msra.mxu0 %v1044_v1  ;;  %v263_v12 = vld [vmem:[#allocation6 + $0x40] sm:$0xff]  ;;  %v264_v63 = vld [vmem:[#allocation6 + $0x48] sm:$0xff]  ;;  %v265_v2 = vld [vmem:[#allocation6 + $0x50] sm:$0xff] }
  0x21   :  { %851 = vmatprep.subr.mxu0 %v1051_v3  ;;  %891 = vmatprep.mubr.f32.mxu1 %v263_v12 }
  0x22   :  { %852 = vmatpush3.msra.mxu0 %v1051_v3  ;;  %s417_s9 = ssub.f32 0.0, %s777_s8 }
  0x23   :  { %853 = vmatprep.subr.mxu0 %v1058_v4  ;;  %s219_s7 = ssub.f32 0.0, %s64_s3  ;;  %v1068_v19 = vstv %s64_s3 }
  0x24   :  { %854 = vmatpush3.msra.mxu0 %v1058_v4  ;;  %s615_s13 = ssub.f32 0.0, %s778_s12 }
  0x25   :  { %856 = vmatmul.mubr.f32.vlgmr.msra.gmra.mxu0 %v66_v5  ;;  %v1070_v20 = vstv %s219_s7  ;;  %v266_v5 = vld [vmem:[#allocation6 + $0x58] sm:$0xff] }
  0x26   :  { %858 = vmatprep.mubr.f32.mxu0 %v67_v6  ;;  %v267_v6 = vld [vmem:[#allocation6 + $0x60] sm:$0xff] }
  0x29   :  { %859 = vmatmul.mubr.f32.gmra.mxu0 %v68_v7  ;;  %v268_v7 = vld [vmem:[#allocation6 + $0x68] sm:$0xff] }
  0x2a   :  { %861 = vmatprep.mubr.f32.mxu0 %v69_v8  ;;  %v269_v8 = vld [vmem:[#allocation6 + $0x70] sm:$0xff] }
  0x2d   :  { %862 = vmatmul.mubr.f32.gmra.mxu0 %v70_v9  ;;  %v270_v9 = vld [vmem:[#allocation6 + $0x78] sm:$0xff] }
  0x2e   :  { %864 = vmatprep.mubr.f32.mxu0 %v71_v10  ;;  %v461_v10 = vld [vmem:[#allocation6 + $0x80] sm:$0xff] }
  0x31   :  { %865 = vmatmul.mubr.f32.gmra.mxu0 %v72_v11 }
  0x32   :  { %927 = vmatprep.mubr.f32.mxu0 %v461_v10 }
  0xe5   :  { %v1064_v13 = vpop.f32.mrf.mxu0 }
  0xe6   :  { %v204_v46 = vsub.f32 %v1064_v13, %v1068_v19  ;;  %v230_v47 = vadd.f32 %v1064_v13, %v1068_v19  ;;  %vm196_vm12 = vcmp.gt.f32.partialorder %v1064_v13, %v1068_v19  ;;  %vm222_vm13 = vcmp.lt.f32.partialorder %v1064_v13, %v1070_v20 }
  0xe7   :  { %v1066_v14 = vpop.f32.mrf.mxu0 }
  0xe8   :  { %v203_v51 = vsub.f32 %v1066_v14, %v1068_v19  ;;  %v229_v52 = vadd.f32 %v1068_v19, %v1066_v14  ;;  %vm195_vm14 = vcmp.gt.f32.partialorder %v1066_v14, %v1068_v19  ;;  %vm221_vm15 = vcmp.lt.f32.partialorder %v1066_v14, %v1070_v20 }
  0xe9   :  { %v860_v15 = vpop.f32.mrf.mxu0  ;;  %v212_v56 = vsel %vm196_vm12, %v204_v46, 0.0  ;;  %v238_v57 = vsel %vm222_vm13, %v230_v47, 0.0 }
  0xea   :  { %v206_v21 = vsub.f32 %v860_v15, %v1068_v19  ;;  %v232_v37 = vadd.f32 %v860_v15, %v1068_v19  ;;  %vm198_vm8 = vcmp.gt.f32.partialorder %v860_v15, %v1068_v19  ;;  %vm224_vm9 = vcmp.lt.f32.partialorder %v860_v15, %v1070_v20 }
  0xeb   :  { %v165_v16 = vpop.f32.mrf.mxu0  ;;  %v211_v59 = vsel %vm195_vm14, %v203_v51, 0.0  ;;  %v237_v60 = vsel %vm221_vm15, %v229_v52, 0.0  ;;  %v246_v61 = vadd.f32 %v238_v57, %v212_v56 }
  0xec   :  { %v205_v41 = vsub.f32 %v165_v16, %v1068_v19  ;;  %v231_v42 = vadd.f32 %v1068_v19, %v165_v16  ;;  %vm197_vm10 = vcmp.gt.f32.partialorder %v165_v16, %v1068_v19  ;;  %vm223_vm11 = vcmp.lt.f32.partialorder %v165_v16, %v1070_v20 }
  0xed   :  { %v863_v17 = vpop.f32.mrf.mxu0  ;;  %v214_v48 = vsel %vm198_vm8, %v206_v21, 0.0  ;;  %v240_v49 = vsel %vm224_vm9, %v232_v37, 0.0  ;;  %v245_v62 = vadd.f32 %v237_v60, %v211_v59 }
  0xee   :  { %vm200_vm0 = vcmp.gt.f32.partialorder %v863_v17, %v1068_v19  ;;  %v208_v25 = vsub.f32 %v863_v17, %v1068_v19  ;;  %vm226_vm3 = vcmp.lt.f32.partialorder %v863_v17, %v1070_v20  ;;  %v234_v26 = vadd.f32 %v863_v17, %v1068_v19 }
  0xef   :  { %v175_v18 = vpop.f32.mrf.mxu0  ;;  %v213_v53 = vsel %vm197_vm10, %v205_v41, 0.0  ;;  %v239_v54 = vsel %vm223_vm11, %v231_v42, 0.0  ;;  %v248_v55 = vadd.f32 %v240_v49, %v214_v48  ;;  %v1134_v17 = vstv %s777_s8 }
  0xf0   :  { %vm199_vm4 = vcmp.gt.f32.partialorder %v175_v18, %v1068_v19  ;;  %v207_v30 = vsub.f32 %v175_v18, %v1068_v19  ;;  %v233_v31 = vadd.f32 %v1068_v19, %v175_v18  ;;  %vm225_vm7 = vcmp.lt.f32.partialorder %v175_v18, %v1070_v20 }
  0xf1   :  { %v866_v22 = vpop.f32.mrf.mxu0  ;;  %v216_v39 = vsel %vm200_vm0, %v208_v25, 0.0  ;;  %v242_v40 = vsel %vm226_vm3, %v234_v26, 0.0  ;;  %v247_v58 = vadd.f32 %v239_v54, %v213_v53  ;;  %v1136_v18 = vstv %s417_s9 }
  0xf2   :  { %vm202_vm1 = vcmp.gt.f32.partialorder %v866_v22, %v1068_v19  ;;  %v210_v23 = vsub.f32 %v866_v22, %v1068_v19  ;;  %vm228_vm2 = vcmp.lt.f32.partialorder %v866_v22, %v1070_v20  ;;  %v236_v24 = vadd.f32 %v866_v22, %v1068_v19 }
  0xf3   :  { %v185_v27 = vpop.f32.mrf.mxu0  ;;  %v215_v43 = vsel %vm199_vm4, %v207_v30, 0.0  ;;  %v241_v44 = vsel %vm225_vm7, %v233_v31, 0.0  ;;  %v250_v45 = vadd.f32 %v242_v40, %v216_v39 }
  0xf4   :  { %vm201_vm5 = vcmp.gt.f32.partialorder %v185_v27, %v1068_v19  ;;  %v209_v28 = vsub.f32 %v185_v27, %v1068_v19  ;;  %vm227_vm6 = vcmp.lt.f32.partialorder %v185_v27, %v1070_v20  ;;  %v235_v29 = vadd.f32 %v1068_v19, %v185_v27 }
  0xf5   :  { %v218_v32 = vsel %vm202_vm1, %v210_v23, 0.0  ;;  %v244_v33 = vsel %vm228_vm2, %v236_v24, 0.0  ;;  %v249_v50 = vadd.f32 %v241_v44, %v215_v43 }
  0xf6   :  { %v252_v34 = vadd.f32 %v244_v33, %v218_v32  ;;  %v217_v35 = vsel %vm201_vm5, %v209_v28, 0.0  ;;  %v243_v36 = vsel %vm227_vm6, %v235_v29, 0.0 }
  0xf7   :  { %v251_v38 = vadd.f32 %v243_v36, %v217_v35 }
  0xf8   :  { %867 = vmatprep.subr.mxu1 %v252_v34 }
  0xf9   :  { %868 = vmatpush3.msra.mxu1 %v252_v34 }
  0xfa   :  { %869 = vmatprep.subr.mxu1 %v251_v38 }
  0xfb   :  { %870 = vmatpush3.msra.mxu1 %v251_v38 }
  0xfc   :  { %871 = vmatprep.subr.mxu1 %v250_v45 }
  0xfd   :  { %872 = vmatpush3.msra.mxu1 %v250_v45 }
  0xfe   :  { %873 = vmatprep.subr.mxu1 %v249_v50 }
  0xff   :  { %874 = vmatpush3.msra.mxu1 %v249_v50 }
 0x100   :  { %875 = vmatprep.subr.mxu1 %v248_v55 }
 0x101   :  { %876 = vmatpush3.msra.mxu1 %v248_v55 }
 0x102   :  { %877 = vmatprep.subr.mxu1 %v247_v58 }
 0x103   :  { %878 = vmatpush3.msra.mxu1 %v247_v58 }
 0x104   :  { %879 = vmatprep.subr.mxu1 %v246_v61 }
 0x105   :  { %880 = vmatpush3.msra.mxu1 %v246_v61  ;;  %v462_v61 = vld [vmem:[#allocation6 + $0x88] sm:$0xff] }
 0x106   :  { %881 = vmatprep.subr.mxu1 %v245_v62 }
 0x107   :  { %882 = vmatpush3.msra.mxu1 %v245_v62  ;;  %v463_v62 = vld [vmem:[#allocation6 + $0x90] sm:$0xff] }
 0x108   :  { %883 = vmatprep.subr.mxu1 %v1039_v0 }
 0x109   :  { %884 = vmatpush3.msra.mxu1 %v1039_v0 }
 0x10a   :  { %885 = vmatprep.subr.mxu1 %v1044_v1 }
 0x10b   :  { %886 = vmatpush3.msra.mxu1 %v1044_v1 }
 0x10c   :  { %887 = vmatprep.subr.mxu1 %v1051_v3 }
 0x10d   :  { %888 = vmatpush3.msra.mxu1 %v1051_v3 }
 0x10e   :  { %889 = vmatprep.subr.mxu1 %v1058_v4 }
 0x10f   :  { %890 = vmatpush3.msra.mxu1 %v1058_v4 }
 0x110   :  { %892 = vmatmul.mubr.f32.vlgmr.msra.gmra.mxu1 %v264_v63  ;;  %v464_v63 = vld [vmem:[#allocation6 + $0x98] sm:$0xff] }
 0x111   :  { %894 = vmatprep.mubr.f32.mxu1 %v265_v2  ;;  %v465_v2 = vld [vmem:[#allocation6 + $0xa0] sm:$0xff] }
 0x114   :  { %895 = vmatmul.mubr.f32.gmra.mxu1 %v266_v5  ;;  %v467_v5 = vld [vmem:[#allocation6 + $0xb0] sm:$0xff] }
 0x115   :  { %897 = vmatprep.mubr.f32.mxu1 %v267_v6 }
 0x118   :  { %898 = vmatmul.mubr.f32.gmra.mxu1 %v268_v7 }
 0x119   :  { %900 = vmatprep.mubr.f32.mxu1 %v269_v8 }
 0x11c   :  { %901 = vmatmul.mubr.f32.gmra.mxu1 %v270_v9 }
 0x1d0   :  { %v1130_v11 = vpop.f32.mrf.mxu1 }
 0x1d1   :  { %v402_v44 = vsub.f32 %v1130_v11, %v1134_v17  ;;  %v428_v45 = vadd.f32 %v1130_v11, %v1134_v17  ;;  %vm394_vm12 = vcmp.gt.f32.partialorder %v1130_v11, %v1134_v17  ;;  %vm420_vm13 = vcmp.lt.f32.partialorder %v1130_v11, %v1136_v18 }
 0x1d2   :  { %v1132_v12 = vpop.f32.mrf.mxu1  ;;  %v1204_v11 = vstv %s778_s12 }
 0x1d3   :  { %v401_v49 = vsub.f32 %v1132_v12, %v1134_v17  ;;  %v427_v50 = vadd.f32 %v1134_v17, %v1132_v12  ;;  %vm393_vm14 = vcmp.gt.f32.partialorder %v1132_v12, %v1134_v17  ;;  %vm419_vm15 = vcmp.lt.f32.partialorder %v1132_v12, %v1136_v18 }
 0x1d4   :  { %v896_v13 = vpop.f32.mrf.mxu1  ;;  %v410_v54 = vsel %vm394_vm12, %v402_v44, 0.0  ;;  %v436_v55 = vsel %vm420_vm13, %v428_v45, 0.0  ;;  %v1206_v12 = vstv %s615_s13 }
 0x1d5   :  { %v404_v19 = vsub.f32 %v896_v13, %v1134_v17  ;;  %v430_v35 = vadd.f32 %v896_v13, %v1134_v17  ;;  %vm396_vm8 = vcmp.gt.f32.partialorder %v896_v13, %v1134_v17  ;;  %vm422_vm9 = vcmp.lt.f32.partialorder %v896_v13, %v1136_v18 }
 0x1d6   :  { %v363_v14 = vpop.f32.mrf.mxu1  ;;  %v409_v57 = vsel %vm393_vm14, %v401_v49, 0.0  ;;  %v435_v58 = vsel %vm419_vm15, %v427_v50, 0.0  ;;  %v444_v59 = vadd.f32 %v436_v55, %v410_v54  ;;  %v658_v55 = vld [vmem:[%s1284_s2 + $0x8] sm:$0xff] }
 0x1d7   :  { %v403_v39 = vsub.f32 %v363_v14, %v1134_v17  ;;  %v429_v40 = vadd.f32 %v1134_v17, %v363_v14  ;;  %vm395_vm10 = vcmp.gt.f32.partialorder %v363_v14, %v1134_v17  ;;  %vm421_vm11 = vcmp.lt.f32.partialorder %v363_v14, %v1136_v18 }
 0x1d8   :  { %v899_v15 = vpop.f32.mrf.mxu1  ;;  %v412_v46 = vsel %vm396_vm8, %v404_v19, 0.0  ;;  %v438_v47 = vsel %vm422_vm9, %v430_v35, 0.0  ;;  %v443_v60 = vadd.f32 %v435_v58, %v409_v57  ;;  %v660_v57 = vld [vmem:[%s1284_s2 + $0x18] sm:$0xff] }
 0x1d9   :  { %vm398_vm0 = vcmp.gt.f32.partialorder %v899_v15, %v1134_v17  ;;  %v406_v23 = vsub.f32 %v899_v15, %v1134_v17  ;;  %vm424_vm3 = vcmp.lt.f32.partialorder %v899_v15, %v1136_v18  ;;  %v432_v24 = vadd.f32 %v899_v15, %v1134_v17 }
 0x1da   :  { %v373_v16 = vpop.f32.mrf.mxu1  ;;  %v411_v51 = vsel %vm395_vm10, %v403_v39, 0.0  ;;  %v437_v52 = vsel %vm421_vm11, %v429_v40, 0.0  ;;  %v446_v53 = vadd.f32 %v438_v47, %v412_v46 }
 0x1db   :  { %vm397_vm4 = vcmp.gt.f32.partialorder %v373_v16, %v1134_v17  ;;  %v405_v28 = vsub.f32 %v373_v16, %v1134_v17  ;;  %v431_v29 = vadd.f32 %v1134_v17, %v373_v16  ;;  %vm423_vm7 = vcmp.lt.f32.partialorder %v373_v16, %v1136_v18 }
 0x1dc   :  { %v902_v20 = vpop.f32.mrf.mxu1  ;;  %v414_v37 = vsel %vm398_vm0, %v406_v23, 0.0  ;;  %v440_v38 = vsel %vm424_vm3, %v432_v24, 0.0  ;;  %v445_v56 = vadd.f32 %v437_v52, %v411_v51  ;;  %vm669_vm0 = vcmask 523264  }
 0x1dd   :  { %vm400_vm1 = vcmp.gt.f32.partialorder %v902_v20, %v1134_v17  ;;  %v408_v21 = vsub.f32 %v902_v20, %v1134_v17  ;;  %vm426_vm2 = vcmp.lt.f32.partialorder %v902_v20, %v1136_v18  ;;  %v434_v22 = vadd.f32 %v902_v20, %v1134_v17 }
 0x1de   :  { %v383_v25 = vpop.f32.mrf.mxu1  ;;  %v413_v41 = vsel %vm397_vm4, %v405_v28, 0.0  ;;  %v439_v42 = vsel %vm423_vm7, %v431_v29, 0.0  ;;  %v448_v43 = vadd.f32 %v440_v38, %v414_v37 }
 0x1df   :  { %vm399_vm5 = vcmp.gt.f32.partialorder %v383_v25, %v1134_v17  ;;  %v407_v26 = vsub.f32 %v383_v25, %v1134_v17  ;;  %vm425_vm6 = vcmp.lt.f32.partialorder %v383_v25, %v1136_v18  ;;  %v433_v27 = vadd.f32 %v1134_v17, %v383_v25 }
 0x1e0   :  { %v416_v30 = vsel %vm400_vm1, %v408_v21, 0.0  ;;  %v442_v31 = vsel %vm426_vm2, %v434_v22, 0.0  ;;  %v447_v48 = vadd.f32 %v439_v42, %v413_v41 }
 0x1e1   :  { %v450_v32 = vadd.f32 %v442_v31, %v416_v30  ;;  %v415_v33 = vsel %vm399_vm5, %v407_v26, 0.0  ;;  %v441_v34 = vsel %vm425_vm6, %v433_v27, 0.0 }
 0x1e2   :  { %v449_v36 = vadd.f32 %v441_v34, %v415_v33 }
 0x1e3   :  { %903 = vmatprep.subr.mxu0 %v450_v32 }
 0x1e4   :  { %904 = vmatpush3.msra.mxu0 %v450_v32 }
 0x1e5   :  { %905 = vmatprep.subr.mxu0 %v449_v36 }
 0x1e6   :  { %906 = vmatpush3.msra.mxu0 %v449_v36 }
 0x1e7   :  { %907 = vmatprep.subr.mxu0 %v448_v43 }
 0x1e8   :  { %908 = vmatpush3.msra.mxu0 %v448_v43 }
 0x1e9   :  { %909 = vmatprep.subr.mxu0 %v447_v48 }
 0x1ea   :  { %910 = vmatpush3.msra.mxu0 %v447_v48 }
 0x1eb   :  { %911 = vmatprep.subr.mxu0 %v446_v53 }
 0x1ec   :  { %912 = vmatpush3.msra.mxu0 %v446_v53 }
 0x1ed   :  { %913 = vmatprep.subr.mxu0 %v445_v56 }
 0x1ee   :  { %914 = vmatpush3.msra.mxu0 %v445_v56  ;;  %v659_v56 = vld [vmem:[%s1284_s2 + $0x10] sm:$0xff] }
 0x1ef   :  { %915 = vmatprep.subr.mxu0 %v444_v59 }
 0x1f0   :  { %916 = vmatpush3.msra.mxu0 %v444_v59 }
 0x1f1   :  { %917 = vmatprep.subr.mxu0 %v443_v60 }
 0x1f2   :  { %918 = vmatpush3.msra.mxu0 %v443_v60 }
 0x1f3   :  { %919 = vmatprep.subr.mxu0 %v1039_v0 }
 0x1f4   :  { %920 = vmatpush3.msra.mxu0 %v1039_v0  ;;  %v466_v0 = vld [vmem:[#allocation6 + $0xa8] sm:$0xff] }
 0x1f5   :  { %921 = vmatprep.subr.mxu0 %v1044_v1 }
 0x1f6   :  { %922 = vmatpush3.msra.mxu0 %v1044_v1  ;;  %v468_v1 = vld [vmem:[#allocation6 + $0xb8] sm:$0xff] }
 0x1f7   :  { %923 = vmatprep.subr.mxu0 %v1051_v3 }
 0x1f8   :  { %924 = vmatpush3.msra.mxu0 %v1051_v3  ;;  %v657_v3 = vld [vmem:[%s1284_s2] sm:$0xff] }
 0x1f9   :  { %925 = vmatprep.subr.mxu0 %v1058_v4  ;;  %955 = vmatprep.mubr.msk.f32.mxu1 %vm669_vm0, %v657_v3 }
 0x1fa   :  { %926 = vmatpush3.msra.mxu0 %v1058_v4 }
 0x1fb   :  { %928 = vmatmul.mubr.f32.vlgmr.msra.gmra.mxu0 %v462_v61 }
 0x1fc   :  { %930 = vmatprep.mubr.f32.mxu0 %v463_v62 }
 0x1ff   :  { %931 = vmatmul.mubr.f32.gmra.mxu0 %v464_v63 }
 0x200   :  { %933 = vmatprep.mubr.f32.mxu0 %v465_v2 }
 0x203   :  { %934 = vmatmul.mubr.f32.gmra.mxu0 %v466_v0 }
 0x204   :  { %936 = vmatprep.mubr.f32.mxu0 %v467_v5 }
 0x207   :  { %937 = vmatmul.mubr.f32.gmra.mxu0 %v468_v1 }
 0x2bb   :  { %v1200_v4 = vpop.f32.mrf.mxu0 }
 0x2bc   :  { %v600_v38 = vsub.f32 %v1200_v4, %v1204_v11  ;;  %v626_v39 = vadd.f32 %v1200_v4, %v1204_v11  ;;  %vm592_vm13 = vcmp.gt.f32.partialorder %v1200_v4, %v1204_v11  ;;  %vm618_vm14 = vcmp.lt.f32.partialorder %v1200_v4, %v1206_v12 }
 0x2bd   :  { %v1202_v6 = vpop.f32.mrf.mxu0 }
 0x2be   :  { %v599_v43 = vsub.f32 %v1202_v6, %v1204_v11  ;;  %v625_v44 = vadd.f32 %v1204_v11, %v1202_v6  ;;  %vm591_vm15 = vcmp.gt.f32.partialorder %v1202_v6, %v1204_v11  ;;  %v608_v48 = vsel %vm592_vm13, %v600_v38, 0.0 }
 0x2bf   :  { %v932_v7 = vpop.f32.mrf.mxu0  ;;  %v634_v49 = vsel %vm618_vm14, %v626_v39, 0.0 }
 0x2c0   :  { %v602_v13 = vsub.f32 %v932_v7, %v1204_v11  ;;  %v628_v29 = vadd.f32 %v932_v7, %v1204_v11  ;;  %vm594_vm9 = vcmp.gt.f32.partialorder %v932_v7, %v1204_v11  ;;  %vm620_vm10 = vcmp.lt.f32.partialorder %v932_v7, %v1206_v12 }
 0x2c1   :  { %v561_v8 = vpop.f32.mrf.mxu0  ;;  %v607_v51 = vsel %vm591_vm15, %v599_v43, 0.0  ;;  %v642_v53 = vadd.f32 %v634_v49, %v608_v48 }
 0x2c2   :  { %v601_v33 = vsub.f32 %v561_v8, %v1204_v11  ;;  %v627_v34 = vadd.f32 %v1204_v11, %v561_v8  ;;  %vm593_vm11 = vcmp.gt.f32.partialorder %v561_v8, %v1204_v11  ;;  %vm619_vm12 = vcmp.lt.f32.partialorder %v561_v8, %v1206_v12 }
 0x2c3   :  { %v935_v9 = vpop.f32.mrf.mxu0  ;;  %v610_v40 = vsel %vm594_vm9, %v602_v13, 0.0  ;;  %v636_v41 = vsel %vm620_vm10, %v628_v29, 0.0 }
 0x2c4   :  { %vm596_vm1 = vcmp.gt.f32.partialorder %v935_v9, %v1204_v11  ;;  %v604_v17 = vsub.f32 %v935_v9, %v1204_v11  ;;  %vm622_vm4 = vcmp.lt.f32.partialorder %v935_v9, %v1206_v12  ;;  %v630_v18 = vadd.f32 %v935_v9, %v1204_v11 }
 0x2c5   :  { %v571_v10 = vpop.f32.mrf.mxu0  ;;  %v609_v45 = vsel %vm593_vm11, %v601_v33, 0.0  ;;  %v635_v46 = vsel %vm619_vm12, %v627_v34, 0.0  ;;  %v644_v47 = vadd.f32 %v636_v41, %v610_v40 }
 0x2c6   :  { %vm595_vm5 = vcmp.gt.f32.partialorder %v571_v10, %v1204_v11  ;;  %v603_v22 = vsub.f32 %v571_v10, %v1204_v11  ;;  %v629_v23 = vadd.f32 %v1204_v11, %v571_v10  ;;  %vm621_vm8 = vcmp.lt.f32.partialorder %v571_v10, %v1206_v12 }
 0x2c7   :  { %v938_v14 = vpop.f32.mrf.mxu0  ;;  %v612_v31 = vsel %vm596_vm1, %v604_v17, 0.0  ;;  %v638_v32 = vsel %vm622_vm4, %v630_v18, 0.0  ;;  %vm617_vm1 = vcmp.lt.f32.partialorder %v1202_v6, %v1206_v12  ;;  %v643_v50 = vadd.f32 %v635_v46, %v609_v45 }
 0x2c8   :  { %vm598_vm2 = vcmp.gt.f32.partialorder %v938_v14, %v1204_v11  ;;  %v606_v15 = vsub.f32 %v938_v14, %v1204_v11  ;;  %vm624_vm3 = vcmp.lt.f32.partialorder %v938_v14, %v1206_v12  ;;  %v632_v16 = vadd.f32 %v938_v14, %v1204_v11 }
 0x2c9   :  { %v581_v19 = vpop.f32.mrf.mxu0  ;;  %v611_v35 = vsel %vm595_vm5, %v603_v22, 0.0  ;;  %v637_v36 = vsel %vm621_vm8, %v629_v23, 0.0  ;;  %v646_v37 = vadd.f32 %v638_v32, %v612_v31  ;;  %v633_v52 = vsel %vm617_vm1, %v625_v44, 0.0 }
 0x2ca   :  { %vm597_vm6 = vcmp.gt.f32.partialorder %v581_v19, %v1204_v11  ;;  %v605_v20 = vsub.f32 %v581_v19, %v1204_v11  ;;  %vm623_vm7 = vcmp.lt.f32.partialorder %v581_v19, %v1206_v12  ;;  %v631_v21 = vadd.f32 %v1204_v11, %v581_v19 }
 0x2cb   :  { %v614_v24 = vsel %vm598_vm2, %v606_v15, 0.0  ;;  %v640_v25 = vsel %vm624_vm3, %v632_v16, 0.0  ;;  %v645_v42 = vadd.f32 %v637_v36, %v611_v35  ;;  %v641_v54 = vadd.f32 %v633_v52, %v607_v51 }
 0x2cc   :  { %v613_v26 = vsel %vm597_vm6, %v605_v20, 0.0  ;;  %v639_v27 = vsel %vm623_vm7, %v631_v21, 0.0  ;;  %v648_v28 = vadd.f32 %v640_v25, %v614_v24 }
 0x2cd   :  { %v647_v30 = vadd.f32 %v639_v27, %v613_v26 }
 0x2ce   :  { %939 = vmatprep.subr.mxu1 %v648_v28 }
 0x2cf   :  { %940 = vmatpush3.msra.mxu1 %v648_v28 }
 0x2d0   :  { %941 = vmatprep.subr.mxu1 %v647_v30 }
 0x2d1   :  { %942 = vmatpush3.msra.mxu1 %v647_v30 }
 0x2d2   :  { %943 = vmatprep.subr.mxu1 %v646_v37 }
 0x2d3   :  { %944 = vmatpush3.msra.mxu1 %v646_v37 }
 0x2d4   :  { %945 = vmatprep.subr.mxu1 %v645_v42 }
 0x2d5   :  { %946 = vmatpush3.msra.mxu1 %v645_v42 }
 0x2d6   :  { %947 = vmatprep.subr.mxu1 %v644_v47 }
 0x2d7   :  { %948 = vmatpush3.msra.mxu1 %v644_v47 }
 0x2d8   :  { %949 = vmatprep.subr.mxu1 %v643_v50 }
 0x2d9   :  { %950 = vmatpush3.msra.mxu1 %v643_v50 }
 0x2da   :  { %951 = vmatprep.subr.mxu1 %v642_v53 }
 0x2db   :  { %952 = vmatpush3.msra.mxu1 %v642_v53 }
 0x2dc   :  { %953 = vmatprep.subr.mxu1 %v641_v54 }
 0x2dd   :  { %954 = vmatpush3.msra.mxu1 %v641_v54 }
 0x2de   :  { %956 = vmatmul.mubr.msk.f32.vlgmr.msra.gmra.mxu1 %vm669_vm0, %v658_v55 }
 0x2df   :  { %958 = vmatprep.mubr.msk.f32.mxu1 %vm669_vm0, %v659_v56 }
 0x2e2   :  { %959 = vmatmul.mubr.msk.f32.gmra.mxu1 %vm669_vm0, %v660_v57 }
 0x39e   :  { %v957_v58 = vpop.f32.mrf.mxu1 }
 0x39f   :  { %768 = vst [vmem:[%s1286_s4 + $0x8] sm:$0xff] %v957_v58 }
 0x3a0   :  { %v748_v59 = vpop.f32.mrf.mxu1 }
 0x3a1   :  { %767 = vst [vmem:[%s1286_s4] sm:$0xff] %v748_v59 }
 0x3a2   :  { %v960_v60 = vpop.f32.mrf.mxu1 }
 0x3a3   :  { %770 = vst [vmem:[%s1286_s4 + $0x18] sm:$0xff] %v960_v60 }
 0x3a4   :  { %v758_v61 = vpop.f32.mrf.mxu1 }
 0x3a5   :  { %769 = vst [vmem:[%s1286_s4 + $0x10] sm:$0xff] %v758_v61 }
 0x3a6   :  { %775 = vsyncpa [#allocation4], 1 }
 0x3a7   :  { %776 = vsyncpa [#allocation5], 1 }

</bundles_post_ra>
